<compile_context>
chip_gen: v7x
topology: tpu7x:2x2x1
jax: 0.10.0
libtpu: 0.0.40
codegen_flags: <defaults>
</compile_context>

<pallas_src>
import math

import jax
import jax.numpy as jnp
from jax.experimental import pallas as pl
from jax.experimental.pallas import tpu as pltpu


def _late_fuse_kernel(p_ref, sil_ref, pose_ref, out_ref):
    # p_ref:    (1,) f32 scalar in SMEM (learnable scale)
    # sil_ref:  (B, c_sil * hw)            in VMEM
    # pose_ref: (B, c_pose * hw)           in VMEM
    # out_ref:  (B, (c_sil + c_pose) * hw) in VMEM
    p = p_ref[0]
    l_sil = sil_ref.shape[1]
    scaled = sil_ref[...].astype(jnp.float32) * p
    out_ref[:, :l_sil] = scaled.astype(out_ref.dtype)
    out_ref[:, l_sil:] = pose_ref[...].astype(out_ref.dtype)


# Per-step block bytes (inputs + output, single-buffered).  The pipeline
# double-buffers this (~2x => ~24 MiB), which fits inside the 48 MiB limit we
# request and inside every generation's VMEM (v5e/v6e 128 MiB, v7x 64 MiB).
_STEP_BYTES_BUDGET = 12 * 1024 * 1024
_VMEM_LIMIT_BYTES = 48 * 1024 * 1024


def _choose_batch_block(n, row_bytes):
    """Largest batch block whose (in + out) bytes stay within the step budget.

    Returns either the full batch (always a legal block extent) or a multiple
    of 8 so the sublane dimension of the 2-D block stays dense.
    """
    max_b = max(1, _STEP_BYTES_BUDGET // max(row_bytes, 1))
    if max_b >= n:
        return n
    return min(n, max(8, (max_b // 8) * 8))


def late_fuse(sil, pose, p):
    """out = concat([sil * p, pose], axis=1).  sil/pose: [n, c, *spatial]."""
    assert sil.shape[0] == pose.shape[0], "batch dims must match"
    assert sil.shape[2:] == pose.shape[2:], "spatial dims must match"
    assert sil.dtype == pose.dtype, "dtypes must match (torch.cat semantics)"

    n, c_sil = sil.shape[:2]
    c_pose = pose.shape[1]
    spatial = sil.shape[2:]
    hw = math.prod(spatial) if spatial else 1
    c_out = c_sil + c_pose

    l_sil, l_pose = c_sil * hw, c_pose * hw
    l_out = l_sil + l_pose

    # Lane-folded views: only trailing-dim reshapes, layout stays row-major so
    # reshaping the flat output back to (n, c_out, *spatial) is exact.
    sil_f = sil.reshape(n, l_sil)
    pose_f = pose.reshape(n, l_pose)
    p_arr = jnp.asarray(p, dtype=jnp.float32).reshape(1)

    itemsize = jnp.dtype(sil.dtype).itemsize
    row_bytes = 2 * l_out * itemsize            # read + write bytes per batch row
    b = _choose_batch_block(n, row_bytes)
    grid = (pl.cdiv(n, b),)                     # flat parallel axis (megacore-friendly)

    # Give the pipeline room to grow, but never past v7x's 64 MiB physical
    # VMEM unless a single (rare, huge) batch block forces it.
    vmem_limit = min(max(_VMEM_LIMIT_BYTES, 4 * b * row_bytes), 100 * 1024 * 1024)

    out_f = pl.pallas_call(
        _late_fuse_kernel,
        out_shape=jax.ShapeDtypeStruct((n, l_out), sil.dtype),
        grid=grid,
        in_specs=[
            pl.BlockSpec(memory_space=pltpu.MemorySpace.SMEM),   # p (f32 scalar)
            pl.BlockSpec((b, l_sil), lambda i: (i, 0)),          # sil rows
            pl.BlockSpec((b, l_pose), lambda i: (i, 0)),         # pose rows
        ],
        out_specs=pl.BlockSpec((b, l_out), lambda i: (i, 0)),
        compiler_params=pltpu.CompilerParams(
            dimension_semantics=("parallel",),
            vmem_limit_bytes=vmem_limit,
        ),
    )(p_arr, sil_f, pose_f)

    return out_f.reshape((n, c_out) + spatial)


if __name__ == "__main__":
    key = jax.random.PRNGKey(0)
    k_sil, k_pose = jax.random.split(key)

    # Small shapes consistent with the module: two feature maps sharing batch
    # and spatial dims, concatenated along the channel axis.
    sil = jax.random.normal(k_sil, (2, 4, 16, 16), dtype=jnp.float32)
    pose = jax.random.normal(k_pose, (2, 4, 16, 16), dtype=jnp.float32)
    p_init = 5.0  # nn.Parameter(torch.ones(1) * 5)

    out = late_fuse(sil, pose, p_init)
    jax.block_until_ready(out)

    ref = jnp.concatenate([sil * jnp.float32(p_init), pose], axis=1)
    assert out.shape == (2, 8, 16, 16)
    assert jnp.allclose(out, ref, atol=1e-6, rtol=1e-6)

    print("KERNEL_OK")
</pallas_src>

<mosaic_0001>
module attributes {stable_mosaic.version = 11 : i64} {
  func.func @_late_fuse_kernel(%arg0: i32, %arg1: memref<1xf32, #tpu.memory_space<smem>>, %arg2: memref<2x1024xf32, #tpu.memory_space<vmem>>, %arg3: memref<2x1024xf32, #tpu.memory_space<vmem>>, %arg4: memref<2x2048xf32, #tpu.memory_space<vmem>>) attributes {dimension_semantics = [#tpu.dimension_semantics<parallel>], iteration_bounds = array<i64: 1>, scalar_prefetch = 0 : i64, scratch_operands = 0 : i64, tpu.core_type = #tpu.core_type<tc>, window_params = [{transform_indices = @transform_0, window_bounds = array<i64: 1>}, {transform_indices = @transform_1, window_bounds = array<i64: 2, 1024>}, {transform_indices = @transform_2, window_bounds = array<i64: 2, 1024>}, {transform_indices = @transform_3, window_bounds = array<i64: 2, 2048>}]} {
    %c0 = arith.constant 0 : index
    %0 = memref.load %arg1[%c0] : memref<1xf32, #tpu.memory_space<smem>>
    %c0_0 = arith.constant 0 : index
    %c0_1 = arith.constant 0 : index
    %1 = vector.load %arg2[%c0_0, %c0_1] : memref<2x1024xf32, #tpu.memory_space<vmem>>, vector<2x1024xf32>
    %2 = vector.broadcast %0 : f32 to vector<2x1024xf32>
    %3 = arith.mulf %1, %2 : vector<2x1024xf32>
    %c0_2 = arith.constant 0 : index
    %c0_3 = arith.constant 0 : index
    %4 = vector.load %arg4[%c0_2, %c0_3] : memref<2x2048xf32, #tpu.memory_space<vmem>>, vector<2x1024xf32>
    tpu.vector_store %arg4[%c0_2, %c0_3], %3 {strides = array<i32>} : memref<2x2048xf32, #tpu.memory_space<vmem>>, vector<2x1024xf32>,
    %c0_4 = arith.constant 0 : index
    %c0_5 = arith.constant 0 : index
    %5 = vector.load %arg3[%c0_4, %c0_5] : memref<2x1024xf32, #tpu.memory_space<vmem>>, vector<2x1024xf32>
    %c0_6 = arith.constant 0 : index
    %c1024 = arith.constant 1024 : index
    %6 = vector.load %arg4[%c0_6, %c1024] : memref<2x2048xf32, #tpu.memory_space<vmem>>, vector<2x1024xf32>
    tpu.vector_store %arg4[%c0_6, %c1024], %5 {strides = array<i32>} : memref<2x2048xf32, #tpu.memory_space<vmem>>, vector<2x1024xf32>,
    return
  }
  func.func @transform_0(%arg0: i32) -> i32 {
    %c0_i32 = arith.constant 0 : i32
    %c0_i32_0 = arith.constant 0 : i32
    return %c0_i32 : i32
  }
  func.func @transform_1(%arg0: i32) -> (i32, i32) {
    %c0_i32 = arith.constant 0 : i32
    %c0_i32_0 = arith.constant 0 : i32
    return %arg0, %c0_i32 : i32, i32
  }
  func.func @transform_2(%arg0: i32) -> (i32, i32) {
    %c0_i32 = arith.constant 0 : i32
    %c0_i32_0 = arith.constant 0 : i32
    return %arg0, %c0_i32 : i32, i32
  }
  func.func @transform_3(%arg0: i32) -> (i32, i32) {
    %c0_i32 = arith.constant 0 : i32
    %c0_i32_0 = arith.constant 0 : i32
    return %arg0, %c0_i32 : i32, i32
  }
}

</mosaic_0001>

<bundles_post_ra>
// kernel: tpu_custom_call.1
= control target key start
LH: loop header
LB: loop body
LE: loop exit
PB: predicated region body
PF: predicated region fallthrough
CT: control target
= control target key end

     0   :  { %9 = vsyncpa [#allocation4], 0  ;;  %s205_s0 = inlined_call_operand.<no memory space> [shape: f32[1], index: 0, kind: input, shape index: {}]   ;;  %s206_s1 = inlined_call_operand.hbm [shape: f32[2,1024], index: 1, kind: input, shape index: {}]   ;;  %s207_s2 = inlined_call_operand.hbm [shape: f32[2,1024], index: 2, kind: input, shape index: {}]   ;;  %s208_s3 = inlined_call_operand.hbm [shape: f32[2,2048], index: 3, kind: output, shape index: {}]  }
   0x1   :  { %10 = vsyncpa [#allocation7], 0 }
   0x2   :  { %11 = vsyncpa [#allocation5], 0  ;;  %s143_s12 = smov [#allocation3]   ;;  %s144_s14 = smov [#allocation6]  }
   0x3   :  { %s20_s13 = sshll.u32 %s143_s12, 4  ;;  %s30_s15 = sshll.u32 %s144_s14, 4  ;;  %s21_s13 = int_to_ptr.vmem [resolvable:$true] %s20_s13  ;;  %s31_s15 = int_to_ptr.vmem [resolvable:$true] %s30_s15 }
   0x4   :  { %s71_s18 = scalar_lea.hbm %s206_s1, 256 }
   0x5   :  { %p72_p0 = scmp.ne.s32.totalorder %s206_s1, %s71_s18  ;;  %p75_p1 = scmp.lt.u32.totalorder %s71_s18, %s206_s1 }
   0x7   :  { %p77_p2 = pnand %p75_p1, %p72_p0 }
   0x9   :  { %80 = shalt.err (!%p77_p2)
}
   0xa   :  { %s81_s23 = scalar_lea.vmem %s21_s13, 256  ;;  %p86_p4 = scmp.lt.s32.totalorder %s21_s13, %s21_s13 }
   0xb   :  { %p82_p3 = scmp.ne.s32.totalorder %s21_s13, %s81_s23  ;;  %p87_p5 = scmp.lt.s32.totalorder %s81_s23, %s81_s23 }
   0xd   :  { %p88_p6 = por %p87_p5, %p86_p4 }
   0xf   :  { %p89_p7 = pnand %p88_p6, %p82_p3 }
  0x11   :  { %92 = shalt.err (!%p89_p7)
}
  0x12   :  { %23 = dma.hbm_to_vmem [thread:$0]  %s206_s1, 256, %s21_s13, [#allocation4]  }
  0x13   :  { %s93_s28 = scalar_lea.hbm %s207_s2, 256 }
  0x14   :  { %p94_p8 = scmp.ne.s32.totalorder %s207_s2, %s93_s28  ;;  %p97_p9 = scmp.lt.u32.totalorder %s93_s28, %s207_s2 }
  0x16   :  { %p99_p10 = pnand %p97_p9, %p94_p8 }
  0x18   :  { %102 = shalt.err (!%p99_p10)
}
  0x19   :  { %s103_s6 = scalar_lea.vmem %s31_s15, 256  ;;  %p108_p12 = scmp.lt.s32.totalorder %s31_s15, %s31_s15 }
  0x1a   :  { %p104_p11 = scmp.ne.s32.totalorder %s31_s15, %s103_s6  ;;  %p109_p13 = scmp.lt.s32.totalorder %s103_s6, %s103_s6 }
  0x1c   :  { %p110_p0 = por %p109_p13, %p108_p12 }
  0x1e   :  { %p111_p1 = pnand %p110_p0, %p104_p11 }
  0x20   :  { %114 = shalt.err (!%p111_p1)
}
  0x21   :  { %33 = dma.hbm_to_vmem [thread:$0]  %s207_s2, 256, %s31_s15, [#allocation7]  }
  0x22   :  { %137 = dma.done.wait [#allocation4], 256  }
  0x23   :  { %138 = vsyncadd [#allocation4], 4294967040 }
  0x24   :  { %139 = dma.done.wait [#allocation7], 256  }
  0x25   :  { %140 = vsyncadd [#allocation7], 4294967040  ;;  %v43_v0 = vstv %s205_s0  ;;  %s145_s10 = smov [#allocation8]   ;;  %v41_v1 = vld [vmem:[#allocation3] sm:$0xff]  ;;  %v42_v2 = vld [vmem:[#allocation3 + $0x8] sm:$0xff] }
  0x26   :  { %s58_s11 = sshll.u32 %s145_s10, 4  ;;  %v48_v3 = vld [vmem:[#allocation6] sm:$0xff]  ;;  %v44_v4 = vmul.f32 %v43_v0, %v41_v1  ;;  %v45_v5 = vmul.f32 %v43_v0, %v42_v2  ;;  %v49_v6 = vld [vmem:[#allocation6 + $0x8] sm:$0xff]  ;;  %s59_s11 = int_to_ptr.vmem [resolvable:$true] %s58_s11 }
  0x27   :  { %50 = vst [vmem:[#allocation8 + $0x10] sm:$0xff] %v48_v3  ;;  %51 = vst [vmem:[#allocation8 + $0x18] sm:$0xff] %v49_v6  ;;  %s115_s2 = scalar_lea.vmem %s59_s11, 512  ;;  %p120_p3 = scmp.lt.s32.totalorder %s59_s11, %s59_s11 }
  0x28   :  { %46 = vst [vmem:[#allocation8] sm:$0xff] %v44_v4  ;;  %47 = vst [vmem:[#allocation8 + $0x8] sm:$0xff] %v45_v5  ;;  %p116_p2 = scmp.ne.s32.totalorder %s59_s11, %s115_s2  ;;  %p121_p4 = scmp.lt.s32.totalorder %s115_s2, %s115_s2 }
  0x2a   :  { %p122_p5 = por %p121_p4, %p120_p3 }
  0x2c   :  { %p123_p6 = pnand %p122_p5, %p116_p2 }
  0x2e   :  { %126 = shalt.err (!%p123_p6)
}
  0x2f   :  { %s127_s13 = scalar_lea.hbm %s208_s3, 512 }
  0x30   :  { %p128_p7 = scmp.ne.s32.totalorder %s208_s3, %s127_s13  ;;  %p131_p8 = scmp.lt.u32.totalorder %s127_s13, %s208_s3 }
  0x32   :  { %p133_p9 = pnand %p131_p8, %p128_p7 }
  0x34   :  { %136 = shalt.err (!%p133_p9)
}
  0x35   :  { %61 = dma.vmem_to_hbm [thread:$0]  %s59_s11, 512, %s208_s3, [#allocation5]  }
  0x36   :  { %141 = dma.done.wait [#allocation5], 512  }
  0x37   :  { %142 = vsyncadd [#allocation5], 4294966784 }
  0x38   :  { %65 = vsyncpa [#allocation4], 1 }
  0x39   :  { %66 = vsyncpa [#allocation7], 1 }
  0x3a   :  { %67 = vsyncpa [#allocation5], 1 }

</bundles_post_ra>
